<compile_context>
chip_gen: v5e
topology: v5e:2x2
jax: 0.10.0
libtpu: 0.0.40
codegen_flags: <defaults>
</compile_context>

<pallas_src>
import math

import jax
import jax.numpy as jnp
from jax.experimental import pallas as pl
from jax.experimental.pallas import tpu as pltpu


def _round_up(n, m):
    return ((n + m - 1) // m) * m


def dense_kernel(x1_ref, x2_ref, w1t_ref, w2t_ref, b_ref, o_ref):
    # Two MXU pushes accumulated in f32 (replaces the wrapper-side x concat),
    # one broadcast bias add, lane-dense store.
    acc = jnp.dot(x1_ref[...], w1t_ref[...], preferred_element_type=jnp.float32)
    acc = acc + jnp.dot(x2_ref[...], w2t_ref[...],
                        preferred_element_type=jnp.float32)
    acc = acc + b_ref[...]
    o_ref[...] = acc.astype(o_ref.dtype)


def prepare_dense_params(w1, b1, w2, b2, *, dtype=jnp.float32):
    """One-time weight prep (hoisted out of the forward pass).

    Transposes to (in, out), folds the biases (b1 + b2), and pads the lane
    (out) dim to 128 (256 when out >= 256) so kernel stores are unmasked.
    Zero-padding the out dim is numerically exact (pad cols sliced off later).
    """
    out, in1 = w1.shape
    out2, in2 = w2.shape
    assert out == out2, "both Linear layers must share out_features"
    assert b1.shape == (out,) and b2.shape == (out,)

    align = 256 if out >= 256 else 128
    out_p = _round_up(out, align)
    pad = out_p - out

    w1t = jnp.pad(jnp.asarray(w1, dtype).T, ((0, 0), (0, pad)))   # (in1, out_p)
    w2t = jnp.pad(jnp.asarray(w2, dtype).T, ((0, 0), (0, pad)))   # (in2, out_p)
    bsum = jnp.pad((jnp.asarray(b1, dtype) + jnp.asarray(b2, dtype))
                   .reshape(1, out), ((0, 0), (0, pad)))          # (1, out_p)
    return {"w1t": w1t, "w2t": w2t, "b": bsum, "out": out}


def dense_forward(x1, x2, params, *, tm=512):
    """Computes x1 @ w1.T + b1 + x2 @ w2.T + b2 (PyTorch Linear convention).

    tm is the target batch tile (512 default for all of v5e/v6e/v7x -- the
    memory system prefers big tiles); the effective tile is right-sized to the
    batch so padding waste stays small.
    """
    w1t, w2t, b = params["w1t"], params["w2t"], params["b"]
    out = params["out"]

    B, in1 = x1.shape
    B2, in2 = x2.shape
    assert B == B2, "batch mismatch between Dense inputs"
    assert x1.dtype == x2.dtype, "Dense inputs must share a dtype"
    assert w1t.shape[0] == in1 and w2t.shape[0] == in2
    out_p = w1t.shape[1]

    # --- Batch tiling: bound padding waste (tm_eff = ceil(B / n_tiles), /8). -
    n_tiles = -(-B // tm)
    tm_eff = _round_up(-(-B // n_tiles), 8)
    n_tiles = -(-B // tm_eff)
    B_pad = n_tiles * tm_eff
    if B_pad != B:
        x1 = jnp.pad(x1, ((0, B_pad - B), (0, 0)))
        x2 = jnp.pad(x2, ((0, B_pad - B), (0, 0)))

    # --- Scoped-VMEM budget: 2x-buffered x tiles + out tiles, resident W/b. --
    vmem_bytes = 4 * (2 * tm_eff * (in1 + in2)          # x1/x2 tiles (dbl buf)
                      + 2 * (in1 + in2 + 1) * out_p     # weights + bias
                      + 2 * tm_eff * out_p)             # output tile (dbl buf)
    vmem_limit = min(max(int(vmem_bytes * 1.5), 16 << 20), 100 << 20)

    y = pl.pallas_call(
        dense_kernel,
        out_shape=jax.ShapeDtypeStruct((B_pad, out_p), x1.dtype),
        grid_spec=pltpu.PrefetchScalarGridSpec(
            num_scalar_prefetch=0,
            grid=(n_tiles,),
            in_specs=[
                pl.BlockSpec((tm_eff, in1), lambda i: (i, 0)),   # x1 tile
                pl.BlockSpec((tm_eff, in2), lambda i: (i, 0)),   # x2 tile
                pl.BlockSpec((in1, out_p), lambda i: (0, 0)),    # W1^T (resident)
                pl.BlockSpec((in2, out_p), lambda i: (0, 0)),    # W2^T (resident)
                pl.BlockSpec((1, out_p), lambda i: (0, 0)),      # folded bias row
            ],
            out_specs=pl.BlockSpec((tm_eff, out_p), lambda i: (i, 0)),
        ),
        compiler_params=pltpu.CompilerParams(
            dimension_semantics=("parallel",),
            vmem_limit_bytes=vmem_limit),
    )(x1, x2, w1t, w2t, b)

    # Strip only the padding that actually exists (keeps lane-dense slab when
    # out is already 128-aligned).
    if B_pad != B:
        y = y[:B]
    if out_p != out:
        y = y[:, :out]
    return y


def init_linear_params(key, in_features, out_features):
    """Deterministic init matching torch.nn.Linear's default (uniform bounds)."""
    k_w, k_b = jax.random.split(key)
    bound = 1.0 / math.sqrt(in_features)
    w = jax.random.uniform(k_w, (out_features, in_features), jnp.float32,
                           minval=-bound, maxval=bound)
    b = jax.random.uniform(k_b, (out_features,), jnp.float32,
                           minval=-bound, maxval=bound)
    return w, b


if __name__ == "__main__":
    key = jax.random.PRNGKey(0)
    k0, k1, kx0, kx1, kx2 = jax.random.split(key, 5)

    B, in1, in2, out = 16, 32, 64, 48

    # Dense(Ws = [Linear(in1,out), Linear(in2,out), None])
    w1, b1 = init_linear_params(k0, in1, out)
    w2, b2 = init_linear_params(k1, in2, out)

    # One-time weight preparation (hoisted out of the per-call path).
    params = prepare_dense_params(w1, b1, w2, b2)

    # forward(*xs): xs = xs[-len(Ws):]; the None slot's input is ignored.
    x1 = jax.random.normal(kx0, (B, in1), jnp.float32)
    x2 = jax.random.normal(kx1, (B, in2), jnp.float32)
    x_none = jax.random.normal(kx2, (B, 5), jnp.float32)   # paired with None W, skipped

    # Dense.forward(x1, x2, x_none) == W1(x1) + W2(x2)
    y = dense_forward(x1, x2, params)
    y = jax.block_until_ready(y)

    # Reference (plain JAX) check of the exact PyTorch semantics.
    y_ref = x1 @ w1.T + b1 + x2 @ w2.T + b2
    assert y.shape == (B, out)
    assert jnp.allclose(y, y_ref, atol=1e-5, rtol=1e-5)

    print("KERNEL_OK")
</pallas_src>

<mosaic_0001>
module attributes {stable_mosaic.version = 11 : i64} {
  func.func @dense_kernel(%arg0: i32, %arg1: memref<16x32xf32, #tpu.memory_space<vmem>>, %arg2: memref<16x64xf32, #tpu.memory_space<vmem>>, %arg3: memref<32x128xf32, #tpu.memory_space<vmem>>, %arg4: memref<64x128xf32, #tpu.memory_space<vmem>>, %arg5: memref<1x128xf32, #tpu.memory_space<vmem>>, %arg6: memref<16x128xf32, #tpu.memory_space<vmem>>) attributes {dimension_semantics = [#tpu.dimension_semantics<parallel>], iteration_bounds = array<i64: 1>, scalar_prefetch = 0 : i64, scratch_operands = 0 : i64, tpu.core_type = #tpu.core_type<tc>, window_params = [{transform_indices = @transform_0, window_bounds = array<i64: 16, 32>}, {transform_indices = @transform_1, window_bounds = array<i64: 16, 64>}, {pipeline_mode = #tpu.pipeline_mode<synchronous>, transform_indices = @transform_2, window_bounds = array<i64: 32, 128>}, {pipeline_mode = #tpu.pipeline_mode<synchronous>, transform_indices = @transform_3, window_bounds = array<i64: 64, 128>}, {pipeline_mode = #tpu.pipeline_mode<synchronous>, transform_indices = @transform_4, window_bounds = array<i64: 1, 128>}, {transform_indices = @transform_5, window_bounds = array<i64: 16, 128>}]} {
    %c0 = arith.constant 0 : index
    %c0_0 = arith.constant 0 : index
    %0 = vector.load %arg1[%c0, %c0_0] : memref<16x32xf32, #tpu.memory_space<vmem>>, vector<16x32xf32>
    %c0_1 = arith.constant 0 : index
    %c0_2 = arith.constant 0 : index
    %1 = vector.load %arg3[%c0_1, %c0_2] : memref<32x128xf32, #tpu.memory_space<vmem>>, vector<32x128xf32>
    %cst = arith.constant dense<0.000000e+00> : vector<16x128xf32>
    %2 = tpu.matmul %0, %1, %cst {dimension_numbers = #tpu.dot_dimension_numbers<[1], [0], [0], [1], [0, 0, 1, 1], [], []>} : vector<16x32xf32>, vector<32x128xf32>, vector<16x128xf32> -> vector<16x128xf32>
    %c0_3 = arith.constant 0 : index
    %c0_4 = arith.constant 0 : index
    %3 = vector.load %arg2[%c0_3, %c0_4] : memref<16x64xf32, #tpu.memory_space<vmem>>, vector<16x64xf32>
    %c0_5 = arith.constant 0 : index
    %c0_6 = arith.constant 0 : index
    %4 = vector.load %arg4[%c0_5, %c0_6] : memref<64x128xf32, #tpu.memory_space<vmem>>, vector<64x128xf32>
    %cst_7 = arith.constant dense<0.000000e+00> : vector<16x128xf32>
    %5 = tpu.matmul %3, %4, %cst_7 {dimension_numbers = #tpu.dot_dimension_numbers<[1], [0], [0], [1], [0, 0, 1, 1], [], []>} : vector<16x64xf32>, vector<64x128xf32>, vector<16x128xf32> -> vector<16x128xf32>
    %6 = arith.addf %2, %5 : vector<16x128xf32>
    %c0_8 = arith.constant 0 : index
    %c0_9 = arith.constant 0 : index
    %7 = vector.load %arg5[%c0_8, %c0_9] : memref<1x128xf32, #tpu.memory_space<vmem>>, vector<1x128xf32>
    %8 = vector.broadcast %7 : vector<1x128xf32> to vector<16x128xf32>
    %9 = arith.addf %6, %8 : vector<16x128xf32>
    %c0_10 = arith.constant 0 : index
    %c0_11 = arith.constant 0 : index
    %10 = vector.load %arg6[%c0_10, %c0_11] : memref<16x128xf32, #tpu.memory_space<vmem>>, vector<16x128xf32>
    tpu.vector_store %arg6[%c0_10, %c0_11], %9 {strides = array<i32>} : memref<16x128xf32, #tpu.memory_space<vmem>>, vector<16x128xf32>,
    return
  }
  func.func @transform_0(%arg0: i32) -> (i32, i32) {
    %c0_i32 = arith.constant 0 : i32
    %c0_i32_0 = arith.constant 0 : i32
    return %arg0, %c0_i32 : i32, i32
  }
  func.func @transform_1(%arg0: i32) -> (i32, i32) {
    %c0_i32 = arith.constant 0 : i32
    %c0_i32_0 = arith.constant 0 : i32
    return %arg0, %c0_i32 : i32, i32
  }
  func.func @transform_2(%arg0: i32) -> (i32, i32) {
    %c0_i32 = arith.constant 0 : i32
    %c0_i32_0 = arith.constant 0 : i32
    %c0_i32_1 = arith.constant 0 : i32
    return %c0_i32, %c0_i32_0 : i32, i32
  }
  func.func @transform_3(%arg0: i32) -> (i32, i32) {
    %c0_i32 = arith.constant 0 : i32
    %c0_i32_0 = arith.constant 0 : i32
    %c0_i32_1 = arith.constant 0 : i32
    return %c0_i32, %c0_i32_0 : i32, i32
  }
  func.func @transform_4(%arg0: i32) -> (i32, i32) {
    %c0_i32 = arith.constant 0 : i32
    %c0_i32_0 = arith.constant 0 : i32
    %c0_i32_1 = arith.constant 0 : i32
    return %c0_i32, %c0_i32_0 : i32, i32
  }
  func.func @transform_5(%arg0: i32) -> (i32, i32) {
    %c0_i32 = arith.constant 0 : i32
    %c0_i32_0 = arith.constant 0 : i32
    return %arg0, %c0_i32 : i32, i32
  }
}

</mosaic_0001>

<bundles_post_ra>
// kernel: tpu_custom_call.1
= control target key start
LH: loop header
LB: loop body
LE: loop exit
PB: predicated region body
PF: predicated region fallthrough
CT: control target
= control target key end

     0   :  { %10 = vsyncpa [#allocation3], 0  ;;  %s409_s0 = inlined_call_operand.hbm [shape: f32[16,32], index: 0, kind: input, shape index: {}]   ;;  %s410_s1 = inlined_call_operand.hbm [shape: f32[16,64], index: 1, kind: input, shape index: {}]   ;;  %s411_s2 = inlined_call_operand.hbm [shape: f32[32,128], index: 2, kind: input, shape index: {}]   ;;  %s412_s3 = inlined_call_operand.hbm [shape: f32[64,128], index: 3, kind: input, shape index: {}]   ;;  %s413_s4 = inlined_call_operand.vmem [shape: f32[1,128], index: 4, kind: input, shape index: {}]   ;;  %s414_s5 = inlined_call_operand.hbm [shape: f32[16,128], index: 5, kind: output, shape index: {}]  }
   0x1   :  { %11 = vsyncpa [#allocation6], 0 }
   0x2   :  { %12 = vsyncpa [#allocation9], 0 }
   0x3   :  { %13 = vsyncpa [#allocation4], 0  ;;  %s31_s20 = sshll.u32 %s410_s1, 4  ;;  %s337_s21 = smov [#allocation5]   ;;  %s32_s20 = int_to_ptr.hbm [resolvable:$true] %s31_s20 }
   0x4   :  { %s33_s22 = sshll.u32 %s337_s21, 4  ;;  %s18_s25 = sshll.u32 %s409_s0, 4  ;;  %s34_s22 = int_to_ptr.vmem [resolvable:$true] %s33_s22  ;;  %s19_s25 = int_to_ptr.hbm [resolvable:$true] %s18_s25 }
   0x5   :  { %s338_s26 = smov 128   ;;  %s339_s27 = smov 8  }
   0x6   :  { %39 = dma.hbm_to_vmem [thread:$0]  %s32_s20, 256, %s34_s22, [#allocation6], %s338_s26, %s338_s26, %s339_s27  }
   0x7   :  { %s340_s28 = smov [#allocation2]   ;;  %s44_s1 = sshll.u32 %s411_s2, 4  ;;  %s45_s1 = int_to_ptr.hbm [resolvable:$true] %s44_s1 }
   0x8   :  { %s20_s29 = sshll.u32 %s340_s28, 4  ;;  %s57_s8 = sshll.u32 %s412_s3, 4  ;;  %s21_s29 = int_to_ptr.vmem [resolvable:$true] %s20_s29  ;;  %s58_s8 = int_to_ptr.hbm [resolvable:$true] %s57_s8 }
   0x9   :  { %26 = dma.hbm_to_vmem [thread:$0]  %s19_s25, 256, %s21_s29, [#allocation3], %s338_s26, %s338_s26, %s339_s27  }
   0xa   :  { %s341_s9 = smov [#allocation7]   ;;  %s342_s11 = smov [#allocation8]  }
   0xb   :  { %s46_s10 = sshll.u32 %s341_s9, 4  ;;  %s59_s2 = sshll.u32 %s342_s11, 4  ;;  %s47_s10 = int_to_ptr.vmem [resolvable:$true] %s46_s10  ;;  %s60_s2 = int_to_ptr.vmem [resolvable:$true] %s59_s2 }
   0xc   :  { %52 = dma.hbm_to_vmem [thread:$0]  %s45_s1, 512, %s47_s10, [#allocation6], %s338_s26, %s338_s26, %s339_s27  }
   0xd   :  { %65 = dma.hbm_to_vmem [thread:$0]  %s58_s8, 1024, %s60_s2, [#allocation9], %s338_s26, %s338_s26, %s339_s27  }
   0xe   :  { %329 = dma.done.wait [#allocation3], 256  }
   0xf   :  { %330 = vsyncadd [#allocation3], 4294967040 }
  0x10   :  { %331 = dma.done.wait [#allocation6], 768  }
  0x11   :  { %332 = vsyncadd [#allocation6], 4294966528 }
  0x12   :  { %333 = dma.done.wait [#allocation9], 1024  }
  0x13   :  { %334 = vsyncadd [#allocation9], 4294966272  ;;  %v99_v0 = vld [vmem:[#allocation8 + $0x38] sm:$0xff]  ;;  %v98_v1 = vld [vmem:[#allocation8 + $0x30] sm:$0xff]  ;;  %vm130_vm0 = vcmask 261120   ;;  %vm100_vm1 = vcmask 523264  }
  0x14   :  { %115 = vmatpush.msra.mxu0 %v99_v0  ;;  %193 = vmatpush.msra.mxu2 %v99_v0  ;;  %v89_v2 = vld [vmem:[#allocation7 + $0x18] sm:$0xff]  ;;  %v97_v3 = vld [vmem:[#allocation8 + $0x28] sm:$0xff]  ;;  %v88_v4 = vld [vmem:[#allocation7 + $0x10] sm:$0xff]  ;;  %s343_s13 = smov [#allocation10]   ;;  %s174_s17 = sshll.u32 %s414_s5, 4  ;;  %s175_s17 = int_to_ptr.hbm [resolvable:$true] %s174_s17 }
  0x15   :  { %149 = vmatpush.msra.mxu1 %v89_v2  ;;  %v87_v5 = vld [vmem:[#allocation7 + $0x8] sm:$0xff]  ;;  %v96_v6 = vld [vmem:[#allocation8 + $0x20] sm:$0xff]  ;;  %v95_v8 = vld [vmem:[#allocation8 + $0x18] sm:$0xff]  ;;  %s172_s14 = sshll.u32 %s343_s13, 4  ;;  %s173_s14 = int_to_ptr.vmem [resolvable:$true] %s172_s14 }
  0x16   :  { %116 = vmatpush.msra.mxu0 %v98_v1  ;;  %194 = vmatpush.msra.mxu2 %v98_v1  ;;  %v86_v7 = vld [vmem:[#allocation7] sm:$0xff]  ;;  %v94_v10 = vld [vmem:[#allocation8 + $0x10] sm:$0xff]  ;;  %v93_v11 = vld [vmem:[#allocation8 + $0x8] sm:$0xff] }
  0x17   :  { %150 = vmatpush.msra.mxu1 %v88_v4  ;;  %v84_v9 = vld [vmem:[#allocation2] sm:$0xff]  ;;  %v90_v13 = vld [vmem:[#allocation5] sm:$0xff]  ;;  %v91_v14 = vld [vmem:[#allocation5 + $0x8] sm:$0xff] }
  0x18   :  { %117 = vmatpush.msra.mxu0 %v97_v3  ;;  %195 = vmatpush.msra.mxu2 %v97_v3  ;;  %v92_v12 = vld [vmem:[#allocation8] sm:$0xff]  ;;  %v85_v15 = vld [vmem:[#allocation2 + $0x8] sm:$0xff] }
  0x19   :  { %151 = vmatpush.msra.mxu1 %v87_v5  ;;  %v208_v17 = vld [vmem:[%s413_s4] ss:$0 sm:$0xff] }
  0x1a   :  { %118 = vmatpush.msra.mxu0 %v96_v6  ;;  %196 = vmatpush.msra.mxu2 %v96_v6 }
  0x1b   :  { %152 = vmatpush.msra.mxu1 %v86_v7 }
  0x1c   :  { %119 = vmatpush.msra.mxu0 %v95_v8  ;;  %197 = vmatpush.msra.mxu2 %v95_v8 }
  0x1d   :  { %191 = vmatmul.msk.f32.vlgmr.msra.gmra.mxu1 %vm130_vm0, %v84_v9 }
  0x1e   :  { %120 = vmatpush.msra.mxu0 %v94_v10  ;;  %198 = vmatpush.msra.mxu2 %v94_v10 }
  0x20   :  { %121 = vmatpush.msra.mxu0 %v93_v11  ;;  %199 = vmatpush.msra.mxu2 %v93_v11 }
  0x22   :  { %122 = vmatpush.msra.mxu0 %v92_v12  ;;  %200 = vmatpush.msra.mxu2 %v92_v12 }
  0x23   :  { %189 = vmatmul.msk.f32.vlgmr.msra.gmra.mxu0 %vm100_vm1, %v90_v13  ;;  %190 = vmatmul.msk.f32.vlgmr.msra.gmra.mxu2 %vm100_vm1, %v91_v14 }
  0x25   :  { %192 = vmatmul.msk.f32.gmra.mxu1 %vm130_vm0, %v85_v15 }
  0x9a   :  { %v154_v16 = vpop.f32.mrf.mxu1 }
  0xa0   :  { %v124_v18 = vpop.f32.mrf.mxu0 }
  0xa1   :  { %v155_v19 = vadd.f32 %v154_v16, %v124_v18 }
  0xa2   :  { %v157_v21 = vpop.f32.mrf.mxu1 }
  0xa3   :  { %v164_v20 = vadd.f32 %v208_v17, %v155_v19 }
  0xa5   :  { %166 = vst [vmem:[#allocation10] sm:$0xff] %v164_v20 }
  0xa6   :  { %v127_v22 = vpop.f32.mrf.mxu2 }
  0xa7   :  { %v158_v23 = vadd.f32 %v157_v21, %v127_v22 }
  0xa9   :  { %v165_v24 = vadd.f32 %v208_v17, %v158_v23 }
  0xab   :  { %167 = vst [vmem:[#allocation10 + $0x8] sm:$0xff] %v165_v24 }
  0xac   :  { %180 = dma.vmem_to_hbm [thread:$0]  %s173_s14, 256, %s175_s17, [#allocation4], %s338_s26, %s338_s26, %s339_s27  }
  0xad   :  { %335 = dma.done.wait [#allocation4], 256  }
  0xae   :  { %336 = vsyncadd [#allocation4], 4294967040 }
  0xaf   :  { %185 = vsyncpa [#allocation3], 1 }
  0xb0   :  { %186 = vsyncpa [#allocation6], 1 }
  0xb1   :  { %187 = vsyncpa [#allocation9], 1 }
  0xb2   :  { %188 = vsyncpa [#allocation4], 1 }

</bundles_post_ra>
